<compile_context>
chip_gen: v7x
topology: tpu7x:2x2x1
jax: 0.10.0
libtpu: 0.0.40
codegen_flags: <defaults>
</compile_context>

<pallas_src>
import numpy as np
import jax
import jax.numpy as jnp
from jax.experimental import pallas as pl
from jax.experimental.pallas import tpu as pltpu

# ----------------------------------------------------------------------------
# Static geometry of the synthetic FaceNet-style backbone.
# ----------------------------------------------------------------------------
CIN, C1, C2 = 3, 8, 16
EMBED, NUM_CLASSES = 32, 10
H = W = 16
HP, WP = H + 2, W + 2          # spatially padded input extents (conv pad = 1)
HO, WO = H // 2, W // 2        # conv2 (k3, s2, p1) output spatial extents
NP = 8                         # batch padded to one f32 sublane tile
LANES = 128                    # lane-dense width for FC weights / outputs
K1 = WP * CIN                  # conv1 contraction width before lane padding (54)
K1P = 128                      # conv1 contraction width, lane padded
N1 = W * C1                    # conv1 GEMM output width (unpadded W)   (128)
N2 = WO * C2                   # conv2 GEMM output width                (128)
HPAR = HP // 2                 # rows per parity slab of the padded input (9)


# ----------------------------------------------------------------------------
# The single fused kernel.
# ----------------------------------------------------------------------------
def _facenet_fused_kernel(xe_ref, xo_ref, t1_ref, b1_ref, t2_ref, b2_ref,
                          we_ref, be_ref, wc_ref, bc_ref, cen_ref, out_ref):
    # xe_ref : (HPAR*NP, K1P)  even padded input rows 0,2,...,16 (row-major (row, batch))
    # xo_ref : (HPAR*NP, K1P)  odd  padded input rows 1,3,...,17
    # t1_ref : (3, K1P, N1)    conv1 block-Toeplitz weights, one per dy tap
    # b1_ref : (1, N1)         conv1 bias row
    # t2_ref : (3, N1, N2)     conv2 (stride-2) block-Toeplitz weights
    # b2_ref : (1, N2)
    # we_ref : (N2, 128)       GAP column-sum * 1/(HO*WO) folded into fc_embed, lane padded
    # be_ref : (1, 128)
    # wc_ref : (N2, 128)       fc_cls folded through fc_embed (we_eff @ wc), lane padded
    # bc_ref : (1, 128)        be @ wc + bc, lane padded
    f32 = jnp.float32
    M = HO * NP                                     # 64 rows per tap GEMM

    def mm(a, b):
        return jnp.dot(a, b, preferred_element_type=f32)

    # Contiguous, tile-aligned tap slabs of the padded input.
    xe0 = xe_ref[pl.ds(0, M), :]                    # padded rows 0,2,...,14
    xe1 = xe_ref[pl.ds(NP, M), :]                   # padded rows 2,4,...,16
    xo0 = xo_ref[pl.ds(0, M), :]                    # padded rows 1,3,...,15
    xo1 = xo_ref[pl.ds(NP, M), :]                   # padded rows 3,5,...,17

    t1_0, t1_1, t1_2 = t1_ref[0], t1_ref[1], t1_ref[2]
    b1 = b1_ref[...]

    # ---- conv1 (3x3, s1, p1) + ReLU, output rows split by parity ----
    # hA rows (g*NP + b) = conv1 row 2g   ; hB rows = conv1 row 2g+1.
    hA = jnp.maximum(mm(xe0, t1_0) + mm(xo0, t1_1) + mm(xe1, t1_2) + b1, 0.0)
    hB = jnp.maximum(mm(xo0, t1_0) + mm(xe1, t1_1) + mm(xo1, t1_2) + b1, 0.0)

    # ---- conv2 (3x3, s2, p1) + ReLU: 3 tap GEMMs with M = 64 ----
    # output row yo needs conv1 rows 2yo-1 (dy=0, zero for yo=0), 2yo (dy=1), 2yo+1 (dy=2)
    lhs0 = jnp.concatenate(
        [jnp.zeros((NP, N1), f32), hB[: (HO - 1) * NP, :]], axis=0)
    acc2 = (mm(lhs0, t2_ref[0]) + mm(hA, t2_ref[1]) + mm(hB, t2_ref[2])
            + b2_ref[...])
    relu2 = jnp.maximum(acc2, 0.0)                  # (HO*NP, N2)

    # ---- GAP: H reduction here (7 vector adds); W sum + scale folded into we ----
    fsum = jnp.sum(relu2.reshape(HO, NP, N2), axis=0)   # (NP, N2)

    # ---- fc_embed and (pre-folded) fc_cls as two independent lane-dense GEMMs ----
    cen_ref[...] = mm(fsum, we_ref[...]) + be_ref[...]
    out_ref[...] = mm(fsum, wc_ref[...]) + bc_ref[...]


def _block(shape):
    zero = (0,) * len(shape)
    return pl.BlockSpec(shape, lambda i, _zero=zero: _zero)


def _fused_pallas_call(xe, xo, packed):
    return pl.pallas_call(
        _facenet_fused_kernel,
        out_shape=(jax.ShapeDtypeStruct((NP, LANES), jnp.float32),
                   jax.ShapeDtypeStruct((NP, LANES), jnp.float32)),
        grid=(1,),
        in_specs=[
            _block((HPAR * NP, K1P)), _block((HPAR * NP, K1P)),
            _block((3, K1P, N1)), _block((1, N1)),
            _block((3, N1, N2)), _block((1, N2)),
            _block((N2, LANES)), _block((1, LANES)),
            _block((N2, LANES)), _block((1, LANES)),
        ],
        out_specs=(_block((NP, LANES)), _block((NP, LANES))),
        compiler_params=pltpu.CompilerParams(dimension_semantics=("arbitrary",)),
    )(xe, xo, packed["t1"], packed["b1"], packed["t2"], packed["b2"],
      packed["we"], packed["be"], packed["wc"], packed["bc"])


@jax.jit
def _fused_forward(packed, x):
    # Layout plumbing (tiny, once per call): pad batch -> 8, spatial pad 1, move H to the
    # front, fold (W, Cin) into 128 lanes, split padded rows by parity so the kernel only
    # does contiguous tile-aligned loads.  For hot paths this pre-packed layout could be
    # accepted/returned directly at the API boundary to cut dispatch overhead.
    n = x.shape[0]
    xf = x.astype(jnp.float32)
    xp = jnp.pad(xf, ((0, NP - n), (1, 1), (1, 1), (0, 0)))          # (NP, HP, WP, CIN)
    xp = jnp.transpose(xp, (1, 0, 2, 3)).reshape(HP, NP, K1)         # (HP, NP, 54)
    xp = jnp.pad(xp, ((0, 0), (0, 0), (0, K1P - K1)))                # (HP, NP, 128)
    xe = xp[0::2].reshape(HPAR * NP, K1P)                            # even padded rows
    xo = xp[1::2].reshape(HPAR * NP, K1P)                            # odd padded rows
    cen_p, out_p = _fused_pallas_call(xe, xo, packed)
    return cen_p[:n, :EMBED], out_p[:n, :NUM_CLASSES]


# ----------------------------------------------------------------------------
# Synthetic FaceNet parameters + init-time packing into kernel-friendly form.
# ----------------------------------------------------------------------------
def init_facenet_params(key):
    k = jax.random.split(key, 8)
    return {
        "conv1_w": jax.random.normal(k[0], (3, 3, CIN, C1), jnp.float32) * 0.1,
        "conv1_b": jax.random.normal(k[4], (C1,), jnp.float32) * 0.05,
        "conv2_w": jax.random.normal(k[1], (3, 3, C1, C2), jnp.float32) * 0.1,
        "conv2_b": jax.random.normal(k[5], (C2,), jnp.float32) * 0.05,
        "fc_embed_w": jax.random.normal(k[2], (C2, EMBED), jnp.float32) * 0.1,
        "fc_embed_b": jax.random.normal(k[6], (EMBED,), jnp.float32) * 0.05,
        "fc_cls_w": jax.random.normal(k[3], (EMBED, NUM_CLASSES), jnp.float32) * 0.1,
        "fc_cls_b": jax.random.normal(k[7], (NUM_CLASSES,), jnp.float32) * 0.05,
    }


def _pack_params(p):
    """Build block-Toeplitz conv weights, bias rows, GAP-folded fc_embed and
    fc_embed-folded fc_cls once at init (all tiny), so the kernel only does dots."""
    w1 = np.asarray(p["conv1_w"], np.float32)
    b1 = np.asarray(p["conv1_b"], np.float32)
    w2 = np.asarray(p["conv2_w"], np.float32)
    b2 = np.asarray(p["conv2_b"], np.float32)
    we = np.asarray(p["fc_embed_w"], np.float32)
    be = np.asarray(p["fc_embed_b"], np.float32)
    wc = np.asarray(p["fc_cls_w"], np.float32)
    bc = np.asarray(p["fc_cls_b"], np.float32)

    # conv1: output col xo reads padded input col xo + dx (pad=1); N side is 128 lanes.
    t1 = np.zeros((3, K1P, N1), np.float32)
    b1row = np.zeros((1, N1), np.float32)
    for xo in range(W):
        b1row[0, xo * C1:(xo + 1) * C1] = b1
        for dy in range(3):
            for dx in range(3):
                xin = xo + dx
                t1[dy, xin * CIN:(xin + 1) * CIN,
                       xo * C1:(xo + 1) * C1] = w1[dy, dx]

    # conv2 (stride 2, pad 1) against the UNPADDED-W conv1 activation:
    # output col xo reads conv1 col 2*xo + dx - 1; out-of-range taps are just zero rows.
    t2 = np.zeros((3, N1, N2), np.float32)
    b2row = np.zeros((1, N2), np.float32)
    for xo in range(WO):
        b2row[0, xo * C2:(xo + 1) * C2] = b2
        for dy in range(3):
            for dx in range(3):
                xin = 2 * xo + dx - 1
                if 0 <= xin < W:
                    t2[dy, xin * C1:(xin + 1) * C1,
                           xo * C2:(xo + 1) * C2] = w2[dy, dx]

    # GAP (mean over HO*WO positions; column-sum over xo) folded into fc_embed,
    # and fc_cls folded through fc_embed so cen/logits are independent GEMMs.
    sum_cols = np.zeros((N2, C2), np.float32)
    for xo in range(WO):
        sum_cols[xo * C2:(xo + 1) * C2, :] = np.eye(C2, dtype=np.float32)
    we_eff = (sum_cols @ we) / float(HO * WO)                       # (N2, EMBED)
    wec = we_eff @ wc                                               # (N2, NUM_CLASSES)
    bcc = be @ wc + bc                                              # (NUM_CLASSES,)

    we_pad = np.zeros((N2, LANES), np.float32); we_pad[:, :EMBED] = we_eff
    be_pad = np.zeros((1, LANES), np.float32);  be_pad[0, :EMBED] = be
    wc_pad = np.zeros((N2, LANES), np.float32); wc_pad[:, :NUM_CLASSES] = wec
    bc_pad = np.zeros((1, LANES), np.float32);  bc_pad[0, :NUM_CLASSES] = bcc

    packed = dict(t1=t1, b1=b1row, t2=t2, b2=b2row,
                  we=we_pad, be=be_pad, wc=wc_pad, bc=bc_pad)
    return {k: jnp.asarray(v) for k, v in packed.items()}


# ----------------------------------------------------------------------------
# Pure numpy reference (float64) used only for the correctness check in __main__.
# ----------------------------------------------------------------------------
def _reference_forward(params, x):
    x = np.asarray(x, np.float64)
    p = {k: np.asarray(v, np.float64) for k, v in params.items()}

    def conv(h, wgt, bias, stride, pad):
        n, hh, ww, _ = h.shape
        kh, kw, _, co = wgt.shape
        hp = np.pad(h, ((0, 0), (pad, pad), (pad, pad), (0, 0)))
        ho = (hh + 2 * pad - kh) // stride + 1
        wo = (ww + 2 * pad - kw) // stride + 1
        out = np.zeros((n, ho, wo, co), np.float64)
        for dy in range(kh):
            for dx in range(kw):
                patch = hp[:, dy:dy + ho * stride:stride,
                           dx:dx + wo * stride:stride, :]
                out += np.einsum("nhwc,cf->nhwf", patch, wgt[dy, dx])
        return out + bias

    h = np.maximum(conv(x, p["conv1_w"], p["conv1_b"], 1, 1), 0.0)
    h = np.maximum(conv(h, p["conv2_w"], p["conv2_b"], 2, 1), 0.0)
    feat = h.mean(axis=(1, 2))
    cen = feat @ p["fc_embed_w"] + p["fc_embed_b"]
    out = cen @ p["fc_cls_w"] + p["fc_cls_b"]
    return cen, out


# ----------------------------------------------------------------------------
# JAX/Pallas equivalent of the PyTorch `test` wrapper.
# ----------------------------------------------------------------------------
class TestModule:
    def __init__(self, key=jax.random.PRNGKey(42)):
        self.params = init_facenet_params(key)
        self.packed = _pack_params(self.params)

    def forward(self, x_nhwc):
        x = jnp.asarray(x_nhwc, jnp.float32)
        assert x.ndim == 4 and x.shape[1:] == (H, W, CIN) and x.shape[0] <= NP
        # PyTorch permutes NHWC -> NCHW for an NCHW model; the kernel is NHWC-native,
        # so no permutation is needed (semantics identical).
        return _fused_forward(self.packed, x)

    @staticmethod
    def cos_sim(vector_a, vector_b):
        a = jnp.asarray(vector_a, jnp.float32).reshape(-1)
        b = jnp.asarray(vector_b, jnp.float32).reshape(-1)
        num = jnp.dot(a, b)
        denom = jnp.linalg.norm(a) * jnp.linalg.norm(b)
        return 0.5 + 0.5 * num / denom


if __name__ == "__main__":
    key = jax.random.PRNGKey(0)
    x = jax.random.uniform(key, (2, H, W, CIN), jnp.float32)

    model = TestModule()
    cen, output = model.forward(x)
    cen = jax.block_until_ready(cen)
    output = jax.block_until_ready(output)
    assert cen.shape == (2, EMBED) and output.shape == (2, NUM_CLASSES)

    # Validate the fused kernel against a pure-numpy reference of the same math.
    cen_ref, out_ref = _reference_forward(model.params, np.asarray(x))
    assert np.allclose(np.asarray(cen), cen_ref, atol=5e-3, rtol=5e-2), (
        float(np.max(np.abs(np.asarray(cen) - cen_ref))))
    assert np.allclose(np.asarray(output), out_ref, atol=5e-3, rtol=5e-2), (
        float(np.max(np.abs(np.asarray(output) - out_ref))))

    sim = jax.block_until_ready(TestModule.cos_sim(cen[0], cen[1]))
    assert jnp.isfinite(sim)
    print("KERNEL_OK")
</pallas_src>

<mosaic_0001>
module attributes {stable_mosaic.version = 11 : i64} {
  func.func @_facenet_fused_kernel(%arg0: i32, %arg1: memref<72x128xf32, #tpu.memory_space<vmem>>, %arg2: memref<72x128xf32, #tpu.memory_space<vmem>>, %arg3: memref<3x128x128xf32, #tpu.memory_space<vmem>>, %arg4: memref<1x128xf32, #tpu.memory_space<vmem>>, %arg5: memref<3x128x128xf32, #tpu.memory_space<vmem>>, %arg6: memref<1x128xf32, #tpu.memory_space<vmem>>, %arg7: memref<128x128xf32, #tpu.memory_space<vmem>>, %arg8: memref<1x128xf32, #tpu.memory_space<vmem>>, %arg9: memref<128x128xf32, #tpu.memory_space<vmem>>, %arg10: memref<1x128xf32, #tpu.memory_space<vmem>>, %arg11: memref<8x128xf32, #tpu.memory_space<vmem>>, %arg12: memref<8x128xf32, #tpu.memory_space<vmem>>) attributes {dimension_semantics = [#tpu.dimension_semantics<arbitrary>], iteration_bounds = array<i64: 1>, scalar_prefetch = 0 : i64, scratch_operands = 0 : i64, tpu.core_type = #tpu.core_type<tc>, window_params = [{pipeline_mode = #tpu.pipeline_mode<synchronous>, transform_indices = @transform_0, window_bounds = array<i64: 72, 128>}, {pipeline_mode = #tpu.pipeline_mode<synchronous>, transform_indices = @transform_1, window_bounds = array<i64: 72, 128>}, {pipeline_mode = #tpu.pipeline_mode<synchronous>, transform_indices = @transform_2, window_bounds = array<i64: 3, 128, 128>}, {pipeline_mode = #tpu.pipeline_mode<synchronous>, transform_indices = @transform_3, window_bounds = array<i64: 1, 128>}, {pipeline_mode = #tpu.pipeline_mode<synchronous>, transform_indices = @transform_4, window_bounds = array<i64: 3, 128, 128>}, {pipeline_mode = #tpu.pipeline_mode<synchronous>, transform_indices = @transform_5, window_bounds = array<i64: 1, 128>}, {pipeline_mode = #tpu.pipeline_mode<synchronous>, transform_indices = @transform_6, window_bounds = array<i64: 128, 128>}, {pipeline_mode = #tpu.pipeline_mode<synchronous>, transform_indices = @transform_7, window_bounds = array<i64: 1, 128>}, {pipeline_mode = #tpu.pipeline_mode<synchronous>, transform_indices = @transform_8, window_bounds = array<i64: 128, 128>}, {pipeline_mode = #tpu.pipeline_mode<synchronous>, transform_indices = @transform_9, window_bounds = array<i64: 1, 128>}, {pipeline_mode = #tpu.pipeline_mode<synchronous>, transform_indices = @transform_10, window_bounds = array<i64: 8, 128>}, {pipeline_mode = #tpu.pipeline_mode<synchronous>, transform_indices = @transform_11, window_bounds = array<i64: 8, 128>}]} {
    %c0 = arith.constant 0 : index
    %c0_0 = arith.constant 0 : index
    %0 = vector.load %arg1[%c0, %c0_0] : memref<72x128xf32, #tpu.memory_space<vmem>>, vector<64x128xf32>
    %c8 = arith.constant 8 : index
    %c0_1 = arith.constant 0 : index
    %1 = vector.load %arg1[%c8, %c0_1] : memref<72x128xf32, #tpu.memory_space<vmem>>, vector<64x128xf32>
    %c0_2 = arith.constant 0 : index
    %c0_3 = arith.constant 0 : index
    %2 = vector.load %arg2[%c0_2, %c0_3] : memref<72x128xf32, #tpu.memory_space<vmem>>, vector<64x128xf32>
    %c8_4 = arith.constant 8 : index
    %c0_5 = arith.constant 0 : index
    %3 = vector.load %arg2[%c8_4, %c0_5] : memref<72x128xf32, #tpu.memory_space<vmem>>, vector<64x128xf32>
    %c0_6 = arith.constant 0 : index
    %c0_7 = arith.constant 0 : index
    %c0_8 = arith.constant 0 : index
    %4 = vector.load %arg3[%c0_6, %c0_7, %c0_8] : memref<3x128x128xf32, #tpu.memory_space<vmem>>, vector<1x128x128xf32>
    %5 = vector.shape_cast %4 : vector<1x128x128xf32> to vector<128x128xf32>
    %c1 = arith.constant 1 : index
    %c0_9 = arith.constant 0 : index
    %c0_10 = arith.constant 0 : index
    %6 = vector.load %arg3[%c1, %c0_9, %c0_10] : memref<3x128x128xf32, #tpu.memory_space<vmem>>, vector<1x128x128xf32>
    %7 = vector.shape_cast %6 : vector<1x128x128xf32> to vector<128x128xf32>
    %c2 = arith.constant 2 : index
    %c0_11 = arith.constant 0 : index
    %c0_12 = arith.constant 0 : index
    %8 = vector.load %arg3[%c2, %c0_11, %c0_12] : memref<3x128x128xf32, #tpu.memory_space<vmem>>, vector<1x128x128xf32>
    %9 = vector.shape_cast %8 : vector<1x128x128xf32> to vector<128x128xf32>
    %c0_13 = arith.constant 0 : index
    %c0_14 = arith.constant 0 : index
    %10 = vector.load %arg4[%c0_13, %c0_14] : memref<1x128xf32, #tpu.memory_space<vmem>>, vector<1x128xf32>
    %cst = arith.constant dense<0.000000e+00> : vector<64x128xf32>
    %11 = tpu.matmul %0, %5, %cst {dimension_numbers = #tpu.dot_dimension_numbers<[1], [0], [0], [1], [0, 0, 1, 1], [], []>} : vector<64x128xf32>, vector<128x128xf32>, vector<64x128xf32> -> vector<64x128xf32>
    %cst_15 = arith.constant dense<0.000000e+00> : vector<64x128xf32>
    %12 = tpu.matmul %2, %7, %cst_15 {dimension_numbers = #tpu.dot_dimension_numbers<[1], [0], [0], [1], [0, 0, 1, 1], [], []>} : vector<64x128xf32>, vector<128x128xf32>, vector<64x128xf32> -> vector<64x128xf32>
    %13 = arith.addf %11, %12 : vector<64x128xf32>
    %cst_16 = arith.constant dense<0.000000e+00> : vector<64x128xf32>
    %14 = tpu.matmul %1, %9, %cst_16 {dimension_numbers = #tpu.dot_dimension_numbers<[1], [0], [0], [1], [0, 0, 1, 1], [], []>} : vector<64x128xf32>, vector<128x128xf32>, vector<64x128xf32> -> vector<64x128xf32>
    %15 = arith.addf %13, %14 : vector<64x128xf32>
    %16 = vector.broadcast %10 : vector<1x128xf32> to vector<64x128xf32>
    %17 = arith.addf %15, %16 : vector<64x128xf32>
    %cst_17 = arith.constant 0.000000e+00 : f32
    %18 = vector.broadcast %cst_17 : f32 to vector<64x128xf32>
    %19 = arith.maximumf %17, %18 : vector<64x128xf32>
    %cst_18 = arith.constant dense<0.000000e+00> : vector<64x128xf32>
    %20 = tpu.matmul %2, %5, %cst_18 {dimension_numbers = #tpu.dot_dimension_numbers<[1], [0], [0], [1], [0, 0, 1, 1], [], []>} : vector<64x128xf32>, vector<128x128xf32>, vector<64x128xf32> -> vector<64x128xf32>
    %cst_19 = arith.constant dense<0.000000e+00> : vector<64x128xf32>
    %21 = tpu.matmul %1, %7, %cst_19 {dimension_numbers = #tpu.dot_dimension_numbers<[1], [0], [0], [1], [0, 0, 1, 1], [], []>} : vector<64x128xf32>, vector<128x128xf32>, vector<64x128xf32> -> vector<64x128xf32>
    %22 = arith.addf %20, %21 : vector<64x128xf32>
    %cst_20 = arith.constant dense<0.000000e+00> : vector<64x128xf32>
    %23 = tpu.matmul %3, %9, %cst_20 {dimension_numbers = #tpu.dot_dimension_numbers<[1], [0], [0], [1], [0, 0, 1, 1], [], []>} : vector<64x128xf32>, vector<128x128xf32>, vector<64x128xf32> -> vector<64x128xf32>
    %24 = arith.addf %22, %23 : vector<64x128xf32>
    %25 = vector.broadcast %10 : vector<1x128xf32> to vector<64x128xf32>
    %26 = arith.addf %24, %25 : vector<64x128xf32>
    %cst_21 = arith.constant 0.000000e+00 : f32
    %27 = vector.broadcast %cst_21 : f32 to vector<64x128xf32>
    %28 = arith.maximumf %26, %27 : vector<64x128xf32>
    %cst_22 = arith.constant 0.000000e+00 : f32
    %29 = vector.broadcast %cst_22 : f32 to vector<8x128xf32>
    %30 = vector.extract_strided_slice %28 {offsets = [0, 0], sizes = [56, 128], strides = [1, 1]} : vector<64x128xf32> to vector<56x128xf32>
    %31 = tpu.concatenate %29, %30 in 0 : vector<8x128xf32>, vector<56x128xf32> -> vector<64x128xf32>
    %c0_23 = arith.constant 0 : index
    %c0_24 = arith.constant 0 : index
    %c0_25 = arith.constant 0 : index
    %32 = vector.load %arg5[%c0_23, %c0_24, %c0_25] : memref<3x128x128xf32, #tpu.memory_space<vmem>>, vector<1x128x128xf32>
    %33 = vector.shape_cast %32 : vector<1x128x128xf32> to vector<128x128xf32>
    %cst_26 = arith.constant dense<0.000000e+00> : vector<64x128xf32>
    %34 = tpu.matmul %31, %33, %cst_26 {dimension_numbers = #tpu.dot_dimension_numbers<[1], [0], [0], [1], [0, 0, 1, 1], [], []>} : vector<64x128xf32>, vector<128x128xf32>, vector<64x128xf32> -> vector<64x128xf32>
    %c1_27 = arith.constant 1 : index
    %c0_28 = arith.constant 0 : index
    %c0_29 = arith.constant 0 : index
    %35 = vector.load %arg5[%c1_27, %c0_28, %c0_29] : memref<3x128x128xf32, #tpu.memory_space<vmem>>, vector<1x128x128xf32>
    %36 = vector.shape_cast %35 : vector<1x128x128xf32> to vector<128x128xf32>
    %cst_30 = arith.constant dense<0.000000e+00> : vector<64x128xf32>
    %37 = tpu.matmul %19, %36, %cst_30 {dimension_numbers = #tpu.dot_dimension_numbers<[1], [0], [0], [1], [0, 0, 1, 1], [], []>} : vector<64x128xf32>, vector<128x128xf32>, vector<64x128xf32> -> vector<64x128xf32>
    %38 = arith.addf %34, %37 : vector<64x128xf32>
    %c2_31 = arith.constant 2 : index
    %c0_32 = arith.constant 0 : index
    %c0_33 = arith.constant 0 : index
    %39 = vector.load %arg5[%c2_31, %c0_32, %c0_33] : memref<3x128x128xf32, #tpu.memory_space<vmem>>, vector<1x128x128xf32>
    %40 = vector.shape_cast %39 : vector<1x128x128xf32> to vector<128x128xf32>
    %cst_34 = arith.constant dense<0.000000e+00> : vector<64x128xf32>
    %41 = tpu.matmul %28, %40, %cst_34 {dimension_numbers = #tpu.dot_dimension_numbers<[1], [0], [0], [1], [0, 0, 1, 1], [], []>} : vector<64x128xf32>, vector<128x128xf32>, vector<64x128xf32> -> vector<64x128xf32>
    %42 = arith.addf %38, %41 : vector<64x128xf32>
    %c0_35 = arith.constant 0 : index
    %c0_36 = arith.constant 0 : index
    %43 = vector.load %arg6[%c0_35, %c0_36] : memref<1x128xf32, #tpu.memory_space<vmem>>, vector<1x128xf32>
    %44 = vector.broadcast %43 : vector<1x128xf32> to vector<64x128xf32>
    %45 = arith.addf %42, %44 : vector<64x128xf32>
    %cst_37 = arith.constant 0.000000e+00 : f32
    %46 = vector.broadcast %cst_37 : f32 to vector<64x128xf32>
    %47 = arith.maximumf %45, %46 : vector<64x128xf32>
    %48 = vector.shape_cast %47 : vector<64x128xf32> to vector<8x8x128xf32>
    %cst_38 = arith.constant dense<0.000000e+00> : vector<8x128xf32>
    %49 = vector.multi_reduction <add>, %48, %cst_38 [0] : vector<8x8x128xf32> to vector<8x128xf32>
    %c0_39 = arith.constant 0 : index
    %c0_40 = arith.constant 0 : index
    %50 = vector.load %arg7[%c0_39, %c0_40] : memref<128x128xf32, #tpu.memory_space<vmem>>, vector<128x128xf32>
    %cst_41 = arith.constant dense<0.000000e+00> : vector<8x128xf32>
    %51 = tpu.matmul %49, %50, %cst_41 {dimension_numbers = #tpu.dot_dimension_numbers<[1], [0], [0], [1], [0, 0, 1, 1], [], []>} : vector<8x128xf32>, vector<128x128xf32>, vector<8x128xf32> -> vector<8x128xf32>
    %c0_42 = arith.constant 0 : index
    %c0_43 = arith.constant 0 : index
    %52 = vector.load %arg8[%c0_42, %c0_43] : memref<1x128xf32, #tpu.memory_space<vmem>>, vector<1x128xf32>
    %53 = vector.broadcast %52 : vector<1x128xf32> to vector<8x128xf32>
    %54 = arith.addf %51, %53 : vector<8x128xf32>
    %c0_44 = arith.constant 0 : index
    %c0_45 = arith.constant 0 : index
    %55 = vector.load %arg11[%c0_44, %c0_45] : memref<8x128xf32, #tpu.memory_space<vmem>>, vector<8x128xf32>
    tpu.vector_store %arg11[%c0_44, %c0_45], %54 {strides = array<i32>} : memref<8x128xf32, #tpu.memory_space<vmem>>, vector<8x128xf32>,
    %c0_46 = arith.constant 0 : index
    %c0_47 = arith.constant 0 : index
    %56 = vector.load %arg9[%c0_46, %c0_47] : memref<128x128xf32, #tpu.memory_space<vmem>>, vector<128x128xf32>
    %cst_48 = arith.constant dense<0.000000e+00> : vector<8x128xf32>
    %57 = tpu.matmul %49, %56, %cst_48 {dimension_numbers = #tpu.dot_dimension_numbers<[1], [0], [0], [1], [0, 0, 1, 1], [], []>} : vector<8x128xf32>, vector<128x128xf32>, vector<8x128xf32> -> vector<8x128xf32>
    %c0_49 = arith.constant 0 : index
    %c0_50 = arith.constant 0 : index
    %58 = vector.load %arg10[%c0_49, %c0_50] : memref<1x128xf32, #tpu.memory_space<vmem>>, vector<1x128xf32>
    %59 = vector.broadcast %58 : vector<1x128xf32> to vector<8x128xf32>
    %60 = arith.addf %57, %59 : vector<8x128xf32>
    %c0_51 = arith.constant 0 : index
    %c0_52 = arith.constant 0 : index
    %61 = vector.load %arg12[%c0_51, %c0_52] : memref<8x128xf32, #tpu.memory_space<vmem>>, vector<8x128xf32>
    tpu.vector_store %arg12[%c0_51, %c0_52], %60 {strides = array<i32>} : memref<8x128xf32, #tpu.memory_space<vmem>>, vector<8x128xf32>,
    return
  }
  func.func @transform_0(%arg0: i32) -> (i32, i32) {
    %c0_i32 = arith.constant 0 : i32
    %c0_i32_0 = arith.constant 0 : i32
    %c0_i32_1 = arith.constant 0 : i32
    return %c0_i32, %c0_i32_0 : i32, i32
  }
  func.func @transform_1(%arg0: i32) -> (i32, i32) {
    %c0_i32 = arith.constant 0 : i32
    %c0_i32_0 = arith.constant 0 : i32
    %c0_i32_1 = arith.constant 0 : i32
    return %c0_i32, %c0_i32_0 : i32, i32
  }
  func.func @transform_2(%arg0: i32) -> (i32, i32, i32) {
    %c0_i32 = arith.constant 0 : i32
    %c0_i32_0 = arith.constant 0 : i32
    %c0_i32_1 = arith.constant 0 : i32
    %c0_i32_2 = arith.constant 0 : i32
    return %c0_i32, %c0_i32_0, %c0_i32_1 : i32, i32, i32
  }
  func.func @transform_3(%arg0: i32) -> (i32, i32) {
    %c0_i32 = arith.constant 0 : i32
    %c0_i32_0 = arith.constant 0 : i32
    %c0_i32_1 = arith.constant 0 : i32
    return %c0_i32, %c0_i32_0 : i32, i32
  }
  func.func @transform_4(%arg0: i32) -> (i32, i32, i32) {
    %c0_i32 = arith.constant 0 : i32
    %c0_i32_0 = arith.constant 0 : i32
    %c0_i32_1 = arith.constant 0 : i32
    %c0_i32_2 = arith.constant 0 : i32
    return %c0_i32, %c0_i32_0, %c0_i32_1 : i32, i32, i32
  }
  func.func @transform_5(%arg0: i32) -> (i32, i32) {
    %c0_i32 = arith.constant 0 : i32
    %c0_i32_0 = arith.constant 0 : i32
    %c0_i32_1 = arith.constant 0 : i32
    return %c0_i32, %c0_i32_0 : i32, i32
  }
  func.func @transform_6(%arg0: i32) -> (i32, i32) {
    %c0_i32 = arith.constant 0 : i32
    %c0_i32_0 = arith.constant 0 : i32
    %c0_i32_1 = arith.constant 0 : i32
    return %c0_i32, %c0_i32_0 : i32, i32
  }
  func.func @transform_7(%arg0: i32) -> (i32, i32) {
    %c0_i32 = arith.constant 0 : i32
    %c0_i32_0 = arith.constant 0 : i32
    %c0_i32_1 = arith.constant 0 : i32
    return %c0_i32, %c0_i32_0 : i32, i32
  }
  func.func @transform_8(%arg0: i32) -> (i32, i32) {
    %c0_i32 = arith.constant 0 : i32
    %c0_i32_0 = arith.constant 0 : i32
    %c0_i32_1 = arith.constant 0 : i32
    return %c0_i32, %c0_i32_0 : i32, i32
  }
  func.func @transform_9(%arg0: i32) -> (i32, i32) {
    %c0_i32 = arith.constant 0 : i32
    %c0_i32_0 = arith.constant 0 : i32
    %c0_i32_1 = arith.constant 0 : i32
    return %c0_i32, %c0_i32_0 : i32, i32
  }
  func.func @transform_10(%arg0: i32) -> (i32, i32) {
    %c0_i32 = arith.constant 0 : i32
    %c0_i32_0 = arith.constant 0 : i32
    %c0_i32_1 = arith.constant 0 : i32
    return %c0_i32, %c0_i32_0 : i32, i32
  }
  func.func @transform_11(%arg0: i32) -> (i32, i32) {
    %c0_i32 = arith.constant 0 : i32
    %c0_i32_0 = arith.constant 0 : i32
    %c0_i32_1 = arith.constant 0 : i32
    return %c0_i32, %c0_i32_0 : i32, i32
  }
}

</mosaic_0001>

<bundles_post_ra>
// kernel: _fused_forward.1
= control target key start
LH: loop header
LB: loop body
LE: loop exit
PB: predicated region body
PF: predicated region fallthrough
CT: control target
= control target key end

     0   :  { %vm2576_vm0 = vmmov 0   ;;  %s3328_s2 = inlined_call_operand.vmem [shape: f32[3,128,128], index: 2, kind: input, shape index: {}]   ;;  %s3329_s1 = inlined_call_operand.vmem [shape: f32[72,128], index: 1, kind: input, shape index: {}]   ;;  %s3330_s0 = inlined_call_operand.vmem [shape: f32[72,128], index: 0, kind: input, shape index: {}]   ;;  %s3331_s4 = inlined_call_operand.vmem [shape: f32[3,128,128], index: 4, kind: input, shape index: {}]   ;;  %s3332_s6 = inlined_call_operand.vmem [shape: f32[128,128], index: 6, kind: input, shape index: {}]   ;;  %s3333_s3 = inlined_call_operand.vmem [shape: f32[1,128], index: 3, kind: input, shape index: {}]   ;;  %s3334_s5 = inlined_call_operand.vmem [shape: f32[1,128], index: 5, kind: input, shape index: {}]   ;;  %s3335_s8 = inlined_call_operand.vmem [shape: f32[128,128], index: 8, kind: input, shape index: {}]   ;;  %s3336_s7 = inlined_call_operand.vmem [shape: f32[1,128], index: 7, kind: input, shape index: {}]   ;;  %s3337_s10 = inlined_call_operand.vmem [shape: f32[8,128], index: 10, kind: output, shape index: {0}]   ;;  %s3338_s9 = inlined_call_operand.vmem [shape: f32[1,128], index: 9, kind: input, shape index: {}]   ;;  %s3339_s11 = inlined_call_operand.vmem [shape: f32[8,128], index: 11, kind: output, shape index: {1}]  }
   0x1   :  { %v1403_v0 = vld [vmem:[%s3328_s2 + $0x80] sm:$0xff]  ;;  %v1404_v1 = vld [vmem:[%s3328_s2 + $0x88] sm:$0xff]  ;;  %v1405_v5 = vld [vmem:[%s3328_s2 + $0x90] sm:$0xff] }
   0x2   :  { %v69_v2 = vld [vmem:[%s3328_s2] sm:$0xff]  ;;  %v2646_v3 = vpack.c.bf16 %v1404_v1, %v1403_v0  ;;  %v70_v4 = vld [vmem:[%s3328_s2 + $0x8] sm:$0xff]  ;;  %v1406_v6 = vld [vmem:[%s3328_s2 + $0x98] sm:$0xff] }
   0x3   :  { %v2657_v7 = vpack.c.bf16 %v70_v4, %v69_v2  ;;  %v2659_v8 = vpack.c.bf16 %v1406_v6, %v1405_v5  ;;  %v71_v9 = vld [vmem:[%s3328_s2 + $0x10] sm:$0xff]  ;;  %v72_v10 = vld [vmem:[%s3328_s2 + $0x18] sm:$0xff]  ;;  %v1407_v11 = vld [vmem:[%s3328_s2 + $0xa0] sm:$0xff] }
   0x4   :  { %2188 = vmatprep.subr.bf16.mxu1 %v2646_v3  ;;  %v2671_v12 = vpack.c.bf16 %v72_v10, %v71_v9  ;;  %v1408_v13 = vld [vmem:[%s3328_s2 + $0xa8] sm:$0xff]  ;;  %v73_v14 = vld [vmem:[%s3328_s2 + $0x20] sm:$0xff]  ;;  %v1409_v18 = vld [vmem:[%s3328_s2 + $0xb0] sm:$0xff] }
   0x5   :  { %v74_v15 = vld [vmem:[%s3328_s2 + $0x28] sm:$0xff]  ;;  %2220 = vmatprep.subr.bf16.mxu0 %v2657_v7  ;;  %2190 = vmatpush3.bf16.msra.mxu1 %v2646_v3  ;;  %v2686_v16 = vpack.c.bf16 %v1408_v13, %v1407_v11  ;;  %v1410_v19 = vld [vmem:[%s3328_s2 + $0xb8] sm:$0xff]  ;;  %v75_v20 = vld [vmem:[%s3328_s2 + $0x30] sm:$0xff] }
   0x6   :  { %2222 = vmatpush3.bf16.msra.mxu0 %v2657_v7  ;;  %2192 = vmatprep.subr.bf16.mxu1 %v2659_v8  ;;  %v2689_v17 = vpack.c.bf16 %v74_v15, %v73_v14  ;;  %v76_v21 = vld [vmem:[%s3328_s2 + $0x38] sm:$0xff]  ;;  %v2706_v22 = vpack.c.bf16 %v1410_v19, %v1409_v18  ;;  %v1411_v24 = vld [vmem:[%s3328_s2 + $0xc0] sm:$0xff]  ;;  %v1412_v25 = vld [vmem:[%s3328_s2 + $0xc8] sm:$0xff] }
   0x7   :  { %2224 = vmatprep.subr.bf16.mxu0 %v2671_v12  ;;  %v2709_v23 = vpack.c.bf16 %v76_v21, %v75_v20  ;;  %v2720_v26 = vld [vmem:[%s3329_s1] sm:$0xff]  ;;  %v78_v28 = vld [vmem:[%s3328_s2 + $0x48] sm:$0xff]  ;;  %v2735_v30 = vpack.c.bf16 %v1412_v25, %v1411_v24  ;;  %v1413_v32 = vld [vmem:[%s3328_s2 + $0xd0] sm:$0xff] }
   0x8   :  { %v77_v27 = vld [vmem:[%s3328_s2 + $0x40] sm:$0xff]  ;;  %1753 = vmatprep.mubr.f32.mxu1 %v2720_v26  ;;  %v1414_v33 = vld [vmem:[%s3328_s2 + $0xd8] sm:$0xff]  ;;  %v79_v34 = vld [vmem:[%s3328_s2 + $0x50] sm:$0xff] }
   0x9   :  { %2194 = vmatpush3.bf16.msra.mxu1 %v2659_v8  ;;  %v37_v29 = vld [vmem:[%s3330_s0] sm:$0xff]  ;;  %v2738_v31 = vpack.c.bf16 %v78_v28, %v77_v27  ;;  %v80_v35 = vld [vmem:[%s3328_s2 + $0x58] sm:$0xff]  ;;  %v2755_v36 = vpack.c.bf16 %v1414_v33, %v1413_v32  ;;  %v1416_v39 = vld [vmem:[%s3328_s2 + $0xe8] sm:$0xff] }
   0xa   :  { %2226 = vmatpush3.bf16.msra.mxu0 %v2671_v12  ;;  %2196 = vmatprep.subr.bf16.mxu1 %v2686_v16  ;;  %v2758_v37 = vpack.c.bf16 %v80_v35, %v79_v34  ;;  %v1415_v38 = vld [vmem:[%s3328_s2 + $0xe0] sm:$0xff]  ;;  %v82_v41 = vld [vmem:[%s3328_s2 + $0x68] sm:$0xff]  ;;  %v1417_v44 = vld [vmem:[%s3328_s2 + $0xf0] sm:$0xff] }
   0xb   :  { %2228 = vmatprep.subr.bf16.mxu0 %v2689_v17  ;;  %1797 = vmatprep.mubr.f32.mxu0 %v37_v29  ;;  %v81_v40 = vld [vmem:[%s3328_s2 + $0x60] sm:$0xff]  ;;  %v2775_v42 = vpack.c.bf16 %v1416_v39, %v1415_v38  ;;  %v1418_v45 = vld [vmem:[%s3328_s2 + $0xf8] sm:$0xff]  ;;  %v83_v46 = vld [vmem:[%s3328_s2 + $0x70] sm:$0xff] }
   0xc   :  { %v2778_v43 = vpack.c.bf16 %v82_v41, %v81_v40  ;;  %v84_v47 = vld [vmem:[%s3328_s2 + $0x78] sm:$0xff]  ;;  %v2795_v48 = vpack.c.bf16 %v1418_v45, %v1417_v44  ;;  %v1419_v50 = vld [vmem:[%s3328_s2 + $0x100] sm:$0xff]  ;;  %v1420_v51 = vld [vmem:[%s3328_s2 + $0x108] sm:$0xff] }
   0xd   :  { %2198 = vmatpush3.bf16.msra.mxu1 %v2686_v16  ;;  %v2798_v49 = vpack.c.bf16 %v84_v47, %v83_v46  ;;  %v2810_v52 = vpack.c.bf16 %v1420_v51, %v1419_v50  ;;  %v1421_v53 = vld [vmem:[%s3328_s2 + $0x110] sm:$0xff]  ;;  %v1422_v54 = vld [vmem:[%s3328_s2 + $0x118] sm:$0xff]  ;;  %v2822_v55 = vld [vmem:[%s3329_s1 + $0x8] sm:$0xff] }
   0xe   :  { %2230 = vmatpush3.bf16.msra.mxu0 %v2689_v17  ;;  %2200 = vmatprep.subr.bf16.mxu1 %v2706_v22  ;;  %v38_v56 = vld [vmem:[%s3330_s0 + $0x8] sm:$0xff]  ;;  %v2830_v57 = vpack.c.bf16 %v1422_v54, %v1421_v53  ;;  %v1423_v58 = vld [vmem:[%s3328_s2 + $0x120] sm:$0xff]  ;;  %v2842_v60 = vld [vmem:[%s3329_s1 + $0x10] sm:$0xff] }
   0xf   :  { %2232 = vmatprep.subr.bf16.mxu0 %v2709_v23  ;;  %v1424_v59 = vld [vmem:[%s3328_s2 + $0x128] sm:$0xff]  ;;  %v2848_v61 = vld [vmem:[%s3330_s0 + $0x10] sm:$0xff]  ;;  %v2853_v62 = vld [vmem:[%s3329_s1 + $0x18] sm:$0xff] }
  0x10   :  { %v2860_v63 = vld [vmem:[%s3330_s0 + $0x18] sm:$0xff]  ;;  %v2863_v0 = vpack.c.bf16 %v1424_v59, %v1423_v58  ;;  %v1425_v1 = vld [vmem:[%s3328_s2 + $0x130] sm:$0xff]  ;;  %v41_v4 = vld [vmem:[%s3330_s0 + $0x20] sm:$0xff] }
  0x11   :  { %2202 = vmatpush3.bf16.msra.mxu1 %v2706_v22  ;;  %v1426_v2 = vld [vmem:[%s3328_s2 + $0x138] sm:$0xff]  ;;  %v2887_v5 = vld [vmem:[%s3329_s1 + $0x28] sm:$0xff]  ;;  %v1427_v9 = vld [vmem:[%s3328_s2 + $0x140] sm:$0xff] }
  0x12   :  { %2234 = vmatpush3.bf16.msra.mxu0 %v2709_v23  ;;  %2204 = vmatprep.subr.bf16.mxu1 %v2735_v30  ;;  %v42_v6 = vld [vmem:[%s3330_s0 + $0x28] sm:$0xff]  ;;  %v2908_v11 = vld [vmem:[%s3329_s1 + $0x30] sm:$0xff]  ;;  %v2917_v14 = vld [vmem:[%s3329_s1 + $0x38] sm:$0xff] }
  0x13   :  { %2236 = vmatprep.subr.bf16.mxu0 %v2738_v31  ;;  %v1428_v10 = vld [vmem:[%s3328_s2 + $0x148] sm:$0xff]  ;;  %v43_v13 = vld [vmem:[%s3330_s0 + $0x30] sm:$0xff]  ;;  %v44_v15 = vld [vmem:[%s3330_s0 + $0x38] sm:$0xff] }
  0x14   :  { %v1429_v18 = vld [vmem:[%s3328_s2 + $0x150] sm:$0xff]  ;;  %v1430_v19 = vld [vmem:[%s3328_s2 + $0x158] sm:$0xff]  ;;  %v1431_v21 = vld [vmem:[%s3328_s2 + $0x160] sm:$0xff] }
  0x15   :  { %2206 = vmatpush3.bf16.msra.mxu1 %v2735_v30  ;;  %v2939_v20 = vpack.c.bf16 %v1430_v19, %v1429_v18  ;;  %v1432_v24 = vld [vmem:[%s3328_s2 + $0x168] sm:$0xff]  ;;  %v1433_v25 = vld [vmem:[%s3328_s2 + $0x170] sm:$0xff]  ;;  %v1434_v27 = vld [vmem:[%s3328_s2 + $0x178] sm:$0xff] }
  0x16   :  { %2238 = vmatpush3.bf16.msra.mxu0 %v2738_v31  ;;  %2208 = vmatprep.subr.bf16.mxu1 %v2755_v36  ;;  %v2963_v28 = vpack.c.bf16 %v1434_v27, %v1433_v25  ;;  %v1439_v29 = vld [vmem:[%s3331_s4 + $0x98] sm:$0xff]  ;;  %v1441_v32 = vld [vmem:[%s3331_s4 + $0xa8] sm:$0xff]  ;;  %v1442_v34 = vld [vmem:[%s3331_s4 + $0xb0] sm:$0xff] }
  0x17   :  { %2240 = vmatprep.subr.bf16.mxu0 %v2758_v37  ;;  %v1443_v35 = vld [vmem:[%s3331_s4 + $0xb8] sm:$0xff]  ;;  %v1445_v38 = vld [vmem:[%s3331_s4 + $0xc8] sm:$0xff]  ;;  %v1446_v40 = vld [vmem:[%s3331_s4 + $0xd0] sm:$0xff] }
  0x18   :  { %v1447_v41 = vld [vmem:[%s3331_s4 + $0xd8] sm:$0xff]  ;;  %v1448_v44 = vld [vmem:[%s3331_s4 + $0xe0] sm:$0xff]  ;;  %v1449_v45 = vld [vmem:[%s3331_s4 + $0xe8] sm:$0xff] }
  0x19   :  { %2210 = vmatpush3.bf16.msra.mxu1 %v2755_v36  ;;  %v2403_v46 = vpack.c.bf16 %v1449_v45, %v1448_v44  ;;  %v1450_v47 = vld [vmem:[%s3331_s4 + $0xf0] sm:$0xff]  ;;  %v804_v50 = vld [vmem:[%s3331_s4] sm:$0xff]  ;;  %v805_v51 = vld [vmem:[%s3331_s4 + $0x8] sm:$0xff] }
  0x1a   :  { %2242 = vmatpush3.bf16.msra.mxu0 %v2758_v37  ;;  %2212 = vmatprep.subr.bf16.mxu1 %v2775_v42  ;;  %v806_v18 = vld [vmem:[%s3331_s4 + $0x10] sm:$0xff]  ;;  %v807_v19 = vld [vmem:[%s3331_s4 + $0x18] sm:$0xff] }
  0x1b   :  { %2244 = vmatprep.subr.bf16.mxu0 %v2778_v43 }
  0x1d   :  { %2214 = vmatpush3.bf16.msra.mxu1 %v2775_v42 }
  0x1e   :  { %2246 = vmatpush3.bf16.msra.mxu0 %v2778_v43  ;;  %2216 = vmatprep.subr.bf16.mxu1 %v2795_v48 }
  0x1f   :  { %2248 = vmatprep.subr.bf16.mxu0 %v2798_v49 }
  0x21   :  { %2218 = vmatpush3.bf16.msra.mxu1 %v2795_v48 }
  0x22   :  { %2250 = vmatpush3.bf16.msra.mxu0 %v2798_v49  ;;  %2284 = vmatprep.subr.bf16.mxu1 %v2646_v3 }
  0x23   :  { %2252 = vmatprep.subr.bf16.mxu0 %v2810_v52 }
  0x24   :  { %1754 = vmatmul.mubr.f32.vlgmr.msra.gmra.mrb[0].mxu1 %v2822_v55 }
  0x25   :  { %1798 = vmatmul.mubr.f32.vlgmr.msra.gmra.mrb[0].mxu0 %v38_v56  ;;  %2286 = vmatpush3.bf16.msra.mxu1 %v2646_v3  ;;  %v2877_v3 = vld [vmem:[%s3329_s1 + $0x20] sm:$0xff] }
  0x26   :  { %2254 = vmatpush3.bf16.msra.mxu0 %v2810_v52  ;;  %2288 = vmatprep.subr.bf16.mxu1 %v2659_v8 }
  0x27   :  { %2256 = vmatprep.subr.bf16.mxu0 %v2830_v57  ;;  %1756 = vmatprep.mubr.f32.mxu1 %v2842_v60 }
  0x28   :  { %1800 = vmatprep.mubr.f32.mxu0 %v2848_v61  ;;  %1757 = vmatmul.mubr.f32.gmra.mrb[2].mxu1 %v2853_v62 }
  0x29   :  { %2290 = vmatpush3.bf16.msra.mxu1 %v2659_v8  ;;  %1801 = vmatmul.mubr.f32.gmra.mrb[2].mxu0 %v2860_v63  ;;  %v2895_v8 = vpack.c.bf16 %v1426_v2, %v1425_v1  ;;  %v1210_v2 = vld [vmem:[%s3332_s6 + $0x18] sm:$0xff] }
  0x2a   :  { %2258 = vmatpush3.bf16.msra.mxu0 %v2830_v57  ;;  %2292 = vmatprep.subr.bf16.mxu1 %v2686_v16 }
  0x2b   :  { %2260 = vmatprep.subr.bf16.mxu0 %v2863_v0  ;;  %1759 = vmatprep.mubr.f32.mxu1 %v2877_v3 }
  0x2c   :  { %1803 = vmatprep.mubr.f32.mxu0 %v41_v4  ;;  %1760 = vmatmul.mubr.f32.gmra.mrb[4].mxu1 %v2887_v5 }
  0x2d   :  { %2294 = vmatpush3.bf16.msra.mxu1 %v2686_v16  ;;  %1804 = vmatmul.mubr.f32.gmra.mrb[4].mxu0 %v42_v6  ;;  %v2925_v16 = vpack.c.bf16 %v1428_v10, %v1427_v9 }
  0x2e   :  { %2262 = vmatpush3.bf16.msra.mxu0 %v2863_v0  ;;  %2296 = vmatprep.subr.bf16.mxu1 %v2706_v22 }
  0x2f   :  { %2264 = vmatprep.subr.bf16.mxu0 %v2895_v8  ;;  %1762 = vmatprep.mubr.f32.mxu1 %v2908_v11 }
  0x30   :  { %1806 = vmatprep.mubr.f32.mxu0 %v43_v13  ;;  %1763 = vmatmul.mubr.f32.gmra.mrb[6].mxu1 %v2917_v14 }
  0x31   :  { %2298 = vmatpush3.bf16.msra.mxu1 %v2706_v22  ;;  %1807 = vmatmul.mubr.f32.gmra.mrb[6].mxu0 %v44_v15  ;;  %v2951_v22 = vpack.c.bf16 %v1432_v24, %v1431_v21 }
  0x32   :  { %2266 = vmatpush3.bf16.msra.mxu0 %v2895_v8  ;;  %2300 = vmatprep.subr.bf16.mxu1 %v2735_v30 }
  0x33   :  { %2268 = vmatprep.subr.bf16.mxu0 %v2925_v16  ;;  %1841 = vmatprep.mubr.f32.mxu0 %v38_v56 }
  0x34   :  { %1885 = vmatprep.mubr.f32.mxu1 %v38_v56 }
  0x35   :  { %2302 = vmatpush3.bf16.msra.mxu1 %v2735_v30 }
  0x36   :  { %2270 = vmatpush3.bf16.msra.mxu0 %v2925_v16  ;;  %2304 = vmatprep.subr.bf16.mxu1 %v2755_v36 }
  0x37   :  { %2272 = vmatprep.subr.bf16.mxu0 %v2939_v20 }
  0x39   :  { %2306 = vmatpush3.bf16.msra.mxu1 %v2755_v36  ;;  %v2391_v36 = vpack.c.bf16 %v1443_v35, %v1442_v34 }
  0x3a   :  { %2274 = vmatpush3.bf16.msra.mxu0 %v2939_v20  ;;  %2308 = vmatprep.subr.bf16.mxu1 %v2775_v42 }
  0x3b   :  { %2276 = vmatprep.subr.bf16.mxu0 %v2951_v22 }
  0x3d   :  { %2310 = vmatpush3.bf16.msra.mxu1 %v2775_v42  ;;  %v2399_v42 = vpack.c.bf16 %v1447_v41, %v1446_v40 }
  0x3e   :  { %2278 = vmatpush3.bf16.msra.mxu0 %v2951_v22  ;;  %2312 = vmatprep.subr.bf16.mxu1 %v2795_v48 }
  0x3f   :  { %2280 = vmatprep.subr.bf16.mxu0 %v2963_v28 }
  0x41   :  { %2314 = vmatpush3.bf16.msra.mxu1 %v2795_v48  ;;  %v1451_v48 = vld [vmem:[%s3331_s4 + $0xf8] sm:$0xff] }
  0x42   :  { %2282 = vmatpush3.bf16.msra.mxu0 %v2963_v28  ;;  %2316 = vmatprep.subr.bf16.mxu1 %v2657_v7 }
  0x44   :  { %1886 = vmatmul.mubr.f32.vlgmr.msra.gmra.mrb[8].mxu1 %v2848_v61 }
  0x45   :  { %1842 = vmatmul.mubr.f32.vlgmr.msra.gmra.mrb[0].mxu0 %v2848_v61  ;;  %2318 = vmatpush3.bf16.msra.mxu1 %v2657_v7  ;;  %v52_v7 = vld [vmem:[%s3330_s0 + $0x40] sm:$0xff]  ;;  %v2574_v61 = vmov 0.0|0.0  }
  0x46   :  { %1844 = vmatprep.mubr.f32.mxu0 %v2860_v63  ;;  %2320 = vmatprep.subr.bf16.mxu1 %v2671_v12 }
  0x47   :  { %1888 = vmatprep.mubr.f32.mxu1 %v2860_v63  ;;  %v1208_v63 = vld [vmem:[%s3332_s6 + $0x8] sm:$0xff] }
  0x48   :  { %1889 = vmatmul.mubr.f32.gmra.mrb[10].mxu1 %v41_v4 }
  0x49   :  { %1845 = vmatmul.mubr.f32.gmra.mrb[2].mxu0 %v41_v4  ;;  %2322 = vmatpush3.bf16.msra.mxu1 %v2671_v12  ;;  %v1436_v12 = vld [vmem:[%s3331_s4 + $0x80] sm:$0xff] }
  0x4a   :  { %1847 = vmatprep.mubr.f32.mxu0 %v42_v6  ;;  %2324 = vmatprep.subr.bf16.mxu1 %v2689_v17  ;;  %v1211_v4 = vld [vmem:[%s3332_s6 + $0x20] sm:$0xff] }
  0x4b   :  { %1891 = vmatprep.mubr.f32.mxu1 %v42_v6 }
  0x4c   :  { %1892 = vmatmul.mubr.f32.gmra.mrb[12].mxu1 %v43_v13 }
  0x4d   :  { %1848 = vmatmul.mubr.f32.gmra.mrb[4].mxu0 %v43_v13  ;;  %2326 = vmatpush3.bf16.msra.mxu1 %v2689_v17  ;;  %v1437_v17 = vld [vmem:[%s3331_s4 + $0x88] sm:$0xff] }
  0x4e   :  { %1850 = vmatprep.mubr.f32.mxu0 %v44_v15  ;;  %2328 = vmatprep.subr.bf16.mxu1 %v2709_v23 }
  0x4f   :  { %1894 = vmatprep.mubr.f32.mxu1 %v44_v15 }
  0x50   :  { %1895 = vmatmul.mubr.f32.gmra.mrb[14].mxu1 %v52_v7 }
  0x51   :  { %1851 = vmatmul.mubr.f32.gmra.mrb[6].mxu0 %v52_v7  ;;  %2330 = vmatpush3.bf16.msra.mxu1 %v2709_v23  ;;  %v1438_v23 = vld [vmem:[%s3331_s4 + $0x90] sm:$0xff] }
  0x52   :  { %2332 = vmatprep.subr.bf16.mxu1 %v2738_v31  ;;  %1929 = vmatprep.mubr.f32.mxu1 %v2720_v26  ;;  %v2379_v26 = vpack.c.bf16 %v1437_v17, %v1436_v12  ;;  %v2383_v30 = vpack.c.bf16 %v1439_v29, %v1438_v23  ;;  %v808_v17 = vld [vmem:[%s3331_s4 + $0x20] sm:$0xff]  ;;  %v809_v23 = vld [vmem:[%s3331_s4 + $0x28] sm:$0xff] }
  0x53   :  { %v2419_v34 = vpack.c.bf16 %v809_v23, %v808_v17 }
  0x54   :  { %2380 = vmatprep.subr.bf16.mxu0 %v2379_v26 }
  0x55   :  { %2334 = vmatpush3.bf16.msra.mxu1 %v2738_v31  ;;  %v1440_v31 = vld [vmem:[%s3331_s4 + $0xa0] sm:$0xff]  ;;  %2382 = vmatpush3.bf16.msra.mxu0 %v2379_v26 }
  0x56   :  { %2336 = vmatprep.subr.bf16.mxu1 %v2758_v37  ;;  %2384 = vmatprep.subr.bf16.mxu0 %v2383_v30  ;;  %v2387_v33 = vpack.c.bf16 %v1441_v32, %v1440_v31 }
  0x59   :  { %2338 = vmatpush3.bf16.msra.mxu1 %v2758_v37  ;;  %2386 = vmatpush3.bf16.msra.mxu0 %v2383_v30  ;;  %v1444_v37 = vld [vmem:[%s3331_s4 + $0xc0] sm:$0xff] }
  0x5a   :  { %2340 = vmatprep.subr.bf16.mxu1 %v2778_v43  ;;  %2388 = vmatprep.subr.bf16.mxu0 %v2387_v33  ;;  %v2395_v39 = vpack.c.bf16 %v1445_v38, %v1444_v37  ;;  %v810_v37 = vld [vmem:[%s3331_s4 + $0x30] sm:$0xff]  ;;  %v811_v38 = vld [vmem:[%s3331_s4 + $0x38] sm:$0xff] }
  0x5b   :  { %v2423_v45 = vpack.c.bf16 %v811_v38, %v810_v37  ;;  %v1462_v37 = vld [vmem:[%s3331_s4 + $0x150] sm:$0xff]  ;;  %v1463_v38 = vld [vmem:[%s3331_s4 + $0x158] sm:$0xff] }
  0x5d   :  { %2342 = vmatpush3.bf16.msra.mxu1 %v2778_v43  ;;  %2390 = vmatpush3.bf16.msra.mxu0 %v2387_v33  ;;  %v68_v43 = vld [vmem:[%s3329_s1 + $0x40] sm:$0xff] }
  0x5e   :  { %2344 = vmatprep.subr.bf16.mxu1 %v2798_v49  ;;  %2392 = vmatprep.subr.bf16.mxu0 %v2391_v36 }
  0x61   :  { %2346 = vmatpush3.bf16.msra.mxu1 %v2798_v49  ;;  %2394 = vmatpush3.bf16.msra.mxu0 %v2391_v36  ;;  %v2407_v49 = vpack.c.bf16 %v1451_v48, %v1450_v47  ;;  %v812_v47 = vld [vmem:[%s3331_s4 + $0x40] sm:$0xff]  ;;  %v813_v48 = vld [vmem:[%s3331_s4 + $0x48] sm:$0xff] }
  0x62   :  { %2348 = vmatprep.subr.bf16.mxu1 %v2810_v52  ;;  %2396 = vmatprep.subr.bf16.mxu0 %v2395_v39 }
  0x64   :  { %1930 = vmatmul.mubr.f32.vlgmr.msra.gmra.mrb[8].mxu1 %v2822_v55 }
  0x65   :  { %2350 = vmatpush3.bf16.msra.mxu1 %v2810_v52  ;;  %1932 = vmatprep.mubr.f32.mxu1 %v2842_v60  ;;  %v2411_v52 = vpack.c.bf16 %v805_v51, %v804_v50  ;;  %v2427_v51 = vpack.c.bf16 %v813_v48, %v812_v47  ;;  %v1213_v48 = vld [vmem:[%s3332_s6 + $0x30] sm:$0xff] }
  0x66   :  { %2352 = vmatprep.subr.bf16.mxu1 %v2830_v57  ;;  %2398 = vmatpush3.bf16.msra.mxu0 %v2395_v39 }
  0x67   :  { %2400 = vmatprep.subr.bf16.mxu0 %v2399_v42 }
  0x68   :  { %1933 = vmatmul.mubr.f32.gmra.mrb[10].mxu1 %v2853_v62 }
  0x69   :  { %2354 = vmatpush3.bf16.msra.mxu1 %v2830_v57  ;;  %1935 = vmatprep.mubr.f32.mxu1 %v2877_v3 }
  0x6a   :  { %2356 = vmatprep.subr.bf16.mxu1 %v2863_v0  ;;  %2402 = vmatpush3.bf16.msra.mxu0 %v2399_v42 }
  0x6b   :  { %2404 = vmatprep.subr.bf16.mxu0 %v2403_v46 }
  0x6c   :  { %1936 = vmatmul.mubr.f32.gmra.mrb[12].mxu1 %v2887_v5 }
  0x6d   :  { %2358 = vmatpush3.bf16.msra.mxu1 %v2863_v0  ;;  %1938 = vmatprep.mubr.f32.mxu1 %v2908_v11  ;;  %v1209_v0 = vld [vmem:[%s3332_s6 + $0x10] sm:$0xff] }
  0x6e   :  { %2360 = vmatprep.subr.bf16.mxu1 %v2895_v8  ;;  %2406 = vmatpush3.bf16.msra.mxu0 %v2403_v46 }
  0x6f   :  { %2408 = vmatprep.subr.bf16.mxu0 %v2407_v49 }
  0x70   :  { %1939 = vmatmul.mubr.f32.gmra.mrb[14].mxu1 %v2917_v14 }
  0x71   :  { %2362 = vmatpush3.bf16.msra.mxu1 %v2895_v8  ;;  %1973 = vmatprep.mubr.f32.mxu1 %v2822_v55  ;;  %v3107_v8 = vld [vmem:[%s3333_s3] ss:$0 sm:$0xff] }
  0x72   :  { %2364 = vmatprep.subr.bf16.mxu1 %v2925_v16  ;;  %2410 = vmatpush3.bf16.msra.mxu0 %v2407_v49 }
  0x73   :  { %2412 = vmatprep.subr.bf16.mxu0 %v2411_v52 }
  0x75   :  { %2366 = vmatpush3.bf16.msra.mxu1 %v2925_v16 }
  0x76   :  { %2368 = vmatprep.subr.bf16.mxu1 %v2939_v20 }
  0x79   :  { %2370 = vmatpush3.bf16.msra.mxu1 %v2939_v20 }
  0x7a   :  { %2372 = vmatprep.subr.bf16.mxu1 %v2951_v22 }
  0x7d   :  { %2374 = vmatpush3.bf16.msra.mxu1 %v2951_v22 }
  0x7e   :  { %2376 = vmatprep.subr.bf16.mxu1 %v2963_v28 }
  0x81   :  { %2378 = vmatpush3.bf16.msra.mxu1 %v2963_v28  ;;  %v2415_v28 = vpack.c.bf16 %v807_v19, %v806_v18  ;;  %v1456_v18 = vld [vmem:[%s3331_s4 + $0x120] sm:$0xff]  ;;  %v1457_v19 = vld [vmem:[%s3331_s4 + $0x128] sm:$0xff] }
  0x82   :  { %2475 = vmatprep.subr.bf16.mxu1 %v2574_v61 }
  0x84   :  { %1974 = vmatmul.mubr.f32.vlgmr.msra.gmra.mrb[8].mxu1 %v2842_v60 }
  0x85   :  { %1976 = vmatprep.mubr.f32.mxu1 %v2853_v62  ;;  %v1207_v62 = vld [vmem:[%s3332_s6] sm:$0xff] }
  0x86   :  { %v2476_v1 = vpack.c.bf16 %v1208_v63, %v1207_v62  ;;  %v1452_v63 = vld [vmem:[%s3331_s4 + $0x100] sm:$0xff] }
  0x88   :  { %1977 = vmatmul.mubr.f32.gmra.mrb[10].mxu1 %v2877_v3  ;;  %v2479_v3 = vpack.c.bf16 %v1210_v2, %v1209_v0  ;;  %v1453_v0 = vld [vmem:[%s3331_s4 + $0x108] sm:$0xff] }
  0x89   :  { %1979 = vmatprep.mubr.f32.mxu1 %v2887_v5  ;;  %2477 = vmatpush3.bf16.msra.mxu1 %v2476_v1  ;;  %v1212_v5 = vld [vmem:[%s3332_s6 + $0x28] sm:$0xff]  ;;  %v2443_v1 = vpack.c.bf16 %v1453_v0, %v1452_v63  ;;  %v1468_v0 = vld [vmem:[%s3334_s5] ss:$0 sm:$0xff] }
  0x8a   :  { %2478 = vmatprep.subr.bf16.mxu1 %v2574_v61  ;;  %v2482_v6 = vpack.c.bf16 %v1212_v5, %v1211_v4  ;;  %v1454_v5 = vld [vmem:[%s3331_s4 + $0x110] sm:$0xff] }
  0x8c   :  { %1980 = vmatmul.mubr.f32.gmra.mrb[12].mxu1 %v2908_v11 }
  0x8d   :  { %1982 = vmatprep.mubr.f32.mxu1 %v2917_v14  ;;  %2480 = vmatpush3.bf16.msra.mxu1 %v2479_v3 }
  0x8e   :  { %2481 = vmatprep.subr.bf16.mxu1 %v2574_v61 }
  0x90   :  { %1983 = vmatmul.mubr.f32.gmra.mrb[14].mxu1 %v68_v43 }
  0x91   :  { %2483 = vmatpush3.bf16.msra.mxu1 %v2482_v6  ;;  %v1455_v6 = vld [vmem:[%s3331_s4 + $0x118] sm:$0xff] }
  0x92   :  { %2484 = vmatprep.subr.bf16.mxu1 %v2574_v61 }
  0xf7   :  { %v1755_v53 = vpop.f32.mrb[0].mxu1 }
  0xf8   :  { %v186_v54 = vpop.f32.mrb[1].mxu1 }
  0xfb   :  { %v1758_v55 = vpop.f32.mrb[2].mxu1 }
  0xfc   :  { %v196_v56 = vpop.f32.mrb[3].mxu1 }
  0xff   :  { %v1761_v57 = vpop.f32.mrb[4].mxu1 }
 0x100   :  { %v206_v58 = vpop.f32.mrb[5].mxu1 }
 0x103   :  { %v1764_v59 = vpop.f32.mrb[6].mxu1 }
 0x104   :  { %v216_v60 = vpop.f32.mrb[7].mxu1 }
 0x118   :  { %v1843_v9 = vpop.f32.mrb[0].mxu0 }
 0x119   :  { %v2523_v10 = vadd.f32 %v1843_v9, %v1755_v53  ;;  %v396_v11 = vpop.f32.mrb[1].mxu0  ;;  %v815_v53 = vld [vmem:[%s3331_s4 + $0x58] sm:$0xff] }
 0x11a   :  { %v2524_v13 = vadd.f32 %v396_v11, %v186_v54  ;;  %v2575_v54 = vmov 0.0  }
 0x11b   :  { %v450_v14 = vadd.f32 %v2523_v10, %v3107_v8  ;;  %2149 = vmatprep.mubr.msk.f32.mxu1 %vm2576_vm0, %v2575_v54 }
 0x11c   :  { %v449_v15 = vadd.f32 %v2524_v13, %v3107_v8  ;;  %v1846_v16 = vpop.f32.mrb[2].mxu0  ;;  %v2447_v13 = vpack.c.bf16 %v1455_v6, %v1454_v5 }
 0x11d   :  { %v2525_v20 = vadd.f32 %v1846_v16, %v1758_v55  ;;  %v406_v21 = vpop.f32.mrb[3].mxu0  ;;  %v458_v25 = vmax.f32 %v450_v14, 0.0 }
 0x11e   :  { %v457_v24 = vmax.f32 %v449_v15, 0.0  ;;  %v2526_v22 = vadd.f32 %v406_v21, %v196_v56  ;;  %v816_v56 = vld [vmem:[%s3331_s4 + $0x60] sm:$0xff] }
 0x11f   :  { %v452_v27 = vadd.f32 %v2525_v20, %v3107_v8 }
 0x120   :  { %v451_v7 = vadd.f32 %v2526_v22, %v3107_v8  ;;  %v1849_v12 = vpop.f32.mrb[4].mxu0  ;;  %2017 = vmatprep.mubr.f32.mxu0 %v457_v24  ;;  %v2451_v22 = vpack.c.bf16 %v1457_v19, %v1456_v18 }
 0x121   :  { %v2527_v26 = vadd.f32 %v1849_v12, %v1761_v57  ;;  %v416_v29 = vpop.f32.mrb[5].mxu0  ;;  %2018 = vmatmul.mubr.f32.vlgmr.msra.gmra.mrb[8].mxu0 %v458_v25  ;;  %v460_v32 = vmax.f32 %v452_v27, 0.0  ;;  %v817_v57 = vld [vmem:[%s3331_s4 + $0x68] sm:$0xff]  ;;  %v1459_v12 = vld [vmem:[%s3331_s4 + $0x138] sm:$0xff] }
 0x122   :  { %v459_v30 = vmax.f32 %v451_v7, 0.0  ;;  %v2528_v31 = vadd.f32 %v416_v29, %v206_v58  ;;  %2414 = vmatpush3.bf16.msra.mxu0 %v2411_v52  ;;  %v814_v52 = vld [vmem:[%s3331_s4 + $0x50] sm:$0xff]  ;;  %v2435_v58 = vpack.c.bf16 %v817_v57, %v816_v56  ;;  %v1219_v57 = vld [vmem:[%s3332_s6 + $0x60] sm:$0xff] }
 0x123   :  { %v454_v33 = vadd.f32 %v2527_v26, %v3107_v8  ;;  %2416 = vmatprep.subr.bf16.mxu0 %v2415_v28  ;;  %v2431_v55 = vpack.c.bf16 %v815_v53, %v814_v52  ;;  %v1458_v7 = vld [vmem:[%s3331_s4 + $0x130] sm:$0xff] }
 0x124   :  { %v453_v35 = vadd.f32 %v2528_v31, %v3107_v8  ;;  %v1852_v36 = vpop.f32.mrb[6].mxu0  ;;  %2020 = vmatprep.mubr.f32.mxu0 %v459_v30  ;;  %v2455_v29 = vpack.c.bf16 %v1459_v12, %v1458_v7  ;;  %v1217_v53 = vld [vmem:[%s3332_s6 + $0x50] sm:$0xff] }
 0x125   :  { %v2529_v39 = vadd.f32 %v1852_v36, %v1764_v59  ;;  %v426_v40 = vpop.f32.mrb[7].mxu0  ;;  %2021 = vmatmul.mubr.f32.gmra.mrb[10].mxu0 %v460_v32  ;;  %v462_v43 = vmax.f32 %v454_v33, 0.0  ;;  %v818_v59 = vld [vmem:[%s3331_s4 + $0x70] sm:$0xff]  ;;  %v1460_v32 = vld [vmem:[%s3331_s4 + $0x140] sm:$0xff]  ;;  %v1461_v33 = vld [vmem:[%s3331_s4 + $0x148] sm:$0xff] }
 0x126   :  { %v461_v41 = vmax.f32 %v453_v35, 0.0  ;;  %v2530_v42 = vadd.f32 %v426_v40, %v216_v60  ;;  %2418 = vmatpush3.bf16.msra.mxu0 %v2415_v28  ;;  %v819_v60 = vld [vmem:[%s3331_s4 + $0x78] sm:$0xff]  ;;  %v2459_v36 = vpack.c.bf16 %v1461_v33, %v1460_v32  ;;  %v1464_v40 = vld [vmem:[%s3331_s4 + $0x160] sm:$0xff] }
 0x127   :  { %v456_v44 = vadd.f32 %v2529_v39, %v3107_v8  ;;  %2420 = vmatprep.subr.bf16.mxu0 %v2419_v34  ;;  %v2439_v62 = vpack.c.bf16 %v819_v60, %v818_v59  ;;  %v2463_v39 = vpack.c.bf16 %v1463_v38, %v1462_v37  ;;  %v1221_v60 = vld [vmem:[%s3332_s6 + $0x70] sm:$0xff]  ;;  %v1304_v37 = vld [vmem:[%s3335_s8 + $0x18] sm:$0xff] }
 0x128   :  { %v455_v46 = vadd.f32 %v2530_v42, %v3107_v8  ;;  %2023 = vmatprep.mubr.f32.mxu0 %v461_v41  ;;  %v1465_v41 = vld [vmem:[%s3331_s4 + $0x168] sm:$0xff] }
 0x129   :  { %2024 = vmatmul.mubr.f32.gmra.mrb[12].mxu0 %v462_v43  ;;  %v464_v50 = vmax.f32 %v456_v44, 0.0  ;;  %v2467_v42 = vpack.c.bf16 %v1465_v41, %v1464_v40  ;;  %v1466_v43 = vld [vmem:[%s3331_s4 + $0x170] sm:$0xff]  ;;  %v1467_v44 = vld [vmem:[%s3331_s4 + $0x178] sm:$0xff]  ;;  %v1306_v40 = vld [vmem:[%s3335_s8 + $0x28] sm:$0xff] }
 0x12a   :  { %v463_v49 = vmax.f32 %v455_v46, 0.0  ;;  %2422 = vmatpush3.bf16.msra.mxu0 %v2419_v34 }
 0x12b   :  { %2424 = vmatprep.subr.bf16.mxu0 %v2423_v45 }
 0x12c   :  { %2026 = vmatprep.mubr.f32.mxu0 %v463_v49  ;;  %v1214_v49 = vld [vmem:[%s3332_s6 + $0x38] sm:$0xff] }
 0x12d   :  { %2027 = vmatmul.mubr.f32.gmra.mrb[14].mxu0 %v464_v50  ;;  %v2485_v50 = vpack.c.bf16 %v1214_v49, %v1213_v48  ;;  %v1312_v48 = vld [vmem:[%s3335_s8 + $0x58] sm:$0xff] }
 0x12e   :  { %2426 = vmatpush3.bf16.msra.mxu0 %v2423_v45  ;;  %2061 = vmatprep.mubr.f32.mxu0 %v2575_v54  ;;  %v2471_v45 = vpack.c.bf16 %v1467_v44, %v1466_v43  ;;  %v1309_v44 = vld [vmem:[%s3335_s8 + $0x40] sm:$0xff] }
 0x12f   :  { %2428 = vmatprep.subr.bf16.mxu0 %v2427_v51  ;;  %2486 = vmatpush3.bf16.msra.mxu1 %v2485_v50  ;;  %v1313_v50 = vld [vmem:[%s3335_s8 + $0x60] sm:$0xff] }
 0x130   :  { %2487 = vmatprep.subr.bf16.mxu1 %v2574_v61 }
 0x132   :  { %2430 = vmatpush3.bf16.msra.mxu0 %v2427_v51  ;;  %v1216_v51 = vld [vmem:[%s3332_s6 + $0x48] sm:$0xff] }
 0x133   :  { %2432 = vmatprep.subr.bf16.mxu0 %v2431_v55 }
 0x136   :  { %2434 = vmatpush3.bf16.msra.mxu0 %v2431_v55  ;;  %v1218_v55 = vld [vmem:[%s3332_s6 + $0x58] sm:$0xff] }
 0x137   :  { %2436 = vmatprep.subr.bf16.mxu0 %v2435_v58  ;;  %v2491_v56 = vpack.c.bf16 %v1218_v55, %v1217_v53  ;;  %v1316_v53 = vld [vmem:[%s3335_s8 + $0x78] sm:$0xff] }
 0x13a   :  { %2438 = vmatpush3.bf16.msra.mxu0 %v2435_v58  ;;  %v1220_v58 = vld [vmem:[%s3332_s6 + $0x68] sm:$0xff] }
 0x13b   :  { %2440 = vmatprep.subr.bf16.mxu0 %v2439_v62  ;;  %v2494_v59 = vpack.c.bf16 %v1220_v58, %v1219_v57 }
 0x13e   :  { %2442 = vmatpush3.bf16.msra.mxu0 %v2439_v62  ;;  %v1222_v62 = vld [vmem:[%s3332_s6 + $0x78] sm:$0xff] }
 0x13f   :  { %2444 = vmatprep.subr.bf16.mxu0 %v2443_v1  ;;  %v2497_v63 = vpack.c.bf16 %v1222_v62, %v1221_v60  ;;  %v1470_v60 = vld [vmem:[%s3338_s9] ss:$0 sm:$0xff] }
 0x157   :  { %v1975_v2 = vpop.f32.mrb[8].mxu1 }
 0x158   :  { %v3167_v3 = vadd.f32 %v1975_v2, %v3107_v8  ;;  %v741_v4 = vpop.f32.mrb[9].mxu1 }
 0x159   :  { %v788_v9 = vadd.f32 %v3107_v8, %v741_v4 }
 0x15a   :  { %v797_v14 = vmax.f32 %v3167_v3, 0.0 }
 0x15b   :  { %v796_v10 = vmax.f32 %v788_v9, 0.0  ;;  %v1978_v11 = vpop.f32.mrb[10].mxu1 }
 0x15c   :  { %v791_v15 = vadd.f32 %v1978_v11, %v3107_v8  ;;  %v751_v16 = vpop.f32.mrb[11].mxu1 }
 0x15d   :  { %v790_v20 = vadd.f32 %v3107_v8, %v751_v16  ;;  %2062 = vmatmul.mubr.f32.vlgmr.msra.gmra.mrb[8].mxu0 %v796_v10 }
 0x15e   :  { %2446 = vmatpush3.bf16.msra.mxu0 %v2443_v1  ;;  %2064 = vmatprep.mubr.f32.mxu0 %v797_v14  ;;  %v799_v25 = vmax.f32 %v791_v15, 0.0 }
 0x15f   :  { %v798_v21 = vmax.f32 %v790_v20, 0.0  ;;  %v1981_v24 = vpop.f32.mrb[12].mxu1  ;;  %2448 = vmatprep.subr.bf16.mxu0 %v2447_v13 }
 0x160   :  { %v793_v27 = vadd.f32 %v1981_v24, %v3107_v8  ;;  %v761_v28 = vpop.f32.mrb[13].mxu1 }
 0x161   :  { %v792_v17 = vadd.f32 %v3107_v8, %v761_v28  ;;  %2065 = vmatmul.mubr.f32.gmra.mrb[10].mxu0 %v798_v21 }
 0x162   :  { %2450 = vmatpush3.bf16.msra.mxu0 %v2447_v13  ;;  %2067 = vmatprep.mubr.f32.mxu0 %v799_v25  ;;  %v801_v30 = vmax.f32 %v793_v27, 0.0 }
 0x163   :  { %v800_v23 = vmax.f32 %v792_v17, 0.0  ;;  %v1984_v26 = vpop.f32.mrb[14].mxu1  ;;  %2452 = vmatprep.subr.bf16.mxu0 %v2451_v22 }
 0x164   :  { %v771_v31 = vpop.f32.mrb[15].mxu1  ;;  %v795_v46 = vadd.f32 %v1984_v26, %v3107_v8 }
 0x165   :  { %v794_v34 = vadd.f32 %v3107_v8, %v771_v31  ;;  %2068 = vmatmul.mubr.f32.gmra.mrb[12].mxu0 %v800_v23  ;;  %v1215_v8 = vld [vmem:[%s3332_s6 + $0x40] sm:$0xff]  ;;  %v1302_v31 = vld [vmem:[%s3335_s8 + $0x8] sm:$0xff] }
 0x166   :  { %2454 = vmatpush3.bf16.msra.mxu0 %v2451_v22  ;;  %2070 = vmatprep.mubr.f32.mxu0 %v801_v30  ;;  %v803_v47 = vmax.f32 %v795_v46, 0.0  ;;  %v2488_v52 = vpack.c.bf16 %v1216_v51, %v1215_v8  ;;  %v1314_v8 = vld [vmem:[%s3335_s8 + $0x68] sm:$0xff] }
 0x167   :  { %v802_v35 = vmax.f32 %v794_v34, 0.0  ;;  %2456 = vmatprep.subr.bf16.mxu0 %v2455_v29  ;;  %v2518_v51 = vpack.c.bf16 %v1314_v8, %v1313_v50 }
 0x168   :  { %2489 = vmatpush3.bf16.msra.mxu1 %v2488_v52  ;;  %v1315_v52 = vld [vmem:[%s3335_s8 + $0x70] sm:$0xff] }
 0x169   :  { %2071 = vmatmul.mubr.f32.gmra.mrb[14].mxu0 %v802_v35  ;;  %2490 = vmatprep.subr.bf16.mxu1 %v2574_v61  ;;  %v2521_v55 = vpack.c.bf16 %v1316_v53, %v1315_v52 }
 0x16a   :  { %2458 = vmatpush3.bf16.msra.mxu0 %v2455_v29  ;;  %2105 = vmatprep.mubr.f32.mxu0 %v796_v10 }
 0x16b   :  { %2460 = vmatprep.subr.bf16.mxu0 %v2459_v36 }
 0x16c   :  { %2492 = vmatpush3.bf16.msra.mxu1 %v2491_v56  ;;  %v1469_v56 = vld [vmem:[%s3336_s7] ss:$0 sm:$0xff] }
 0x16d   :  { %2493 = vmatprep.subr.bf16.mxu1 %v2574_v61 }
 0x16e   :  { %2462 = vmatpush3.bf16.msra.mxu0 %v2459_v36  ;;  %v1303_v36 = vld [vmem:[%s3335_s8 + $0x10] sm:$0xff] }
 0x16f   :  { %2464 = vmatprep.subr.bf16.mxu0 %v2463_v39  ;;  %v2503_v38 = vpack.c.bf16 %v1304_v37, %v1303_v36 }
 0x170   :  { %2495 = vmatpush3.bf16.msra.mxu1 %v2494_v59 }
 0x171   :  { %2496 = vmatprep.subr.bf16.mxu1 %v2574_v61 }
 0x172   :  { %2466 = vmatpush3.bf16.msra.mxu0 %v2463_v39  ;;  %v1305_v39 = vld [vmem:[%s3335_s8 + $0x20] sm:$0xff] }
 0x173   :  { %2468 = vmatprep.subr.bf16.mxu0 %v2467_v42  ;;  %v2506_v41 = vpack.c.bf16 %v1306_v40, %v1305_v39 }
 0x174   :  { %2498 = vmatpush3.bf16.msra.mxu1 %v2497_v63 }
 0x175   :  { %2499 = vmatprep.subr.bf16.mxu1 %v2574_v61 }
 0x176   :  { %2470 = vmatpush3.bf16.msra.mxu0 %v2467_v42  ;;  %v1307_v42 = vld [vmem:[%s3335_s8 + $0x30] sm:$0xff] }
 0x177   :  { %2472 = vmatprep.subr.bf16.mxu0 %v2471_v45 }
 0x17a   :  { %2474 = vmatpush3.bf16.msra.mxu0 %v2471_v45  ;;  %v1310_v45 = vld [vmem:[%s3335_s8 + $0x48] sm:$0xff] }
 0x17b   :  { %v2512_v46 = vpack.c.bf16 %v1310_v45, %v1309_v44 }
 0x17d   :  { %2106 = vmatmul.mubr.f32.vlgmr.msra.gmra.mrb[8].mxu0 %v797_v14 }
 0x17e   :  { %2108 = vmatprep.mubr.f32.mxu0 %v798_v21 }
 0x181   :  { %2109 = vmatmul.mubr.f32.gmra.mrb[10].mxu0 %v799_v25 }
 0x182   :  { %2111 = vmatprep.mubr.f32.mxu0 %v800_v23 }
 0x185   :  { %2112 = vmatmul.mubr.f32.gmra.mrb[12].mxu0 %v801_v30  ;;  %v1301_v30 = vld [vmem:[%s3335_s8] sm:$0xff] }
 0x186   :  { %2114 = vmatprep.mubr.f32.mxu0 %v802_v35  ;;  %v2500_v34 = vpack.c.bf16 %v1302_v31, %v1301_v30 }
 0x189   :  { %2115 = vmatmul.mubr.f32.gmra.mrb[14].mxu0 %v803_v47  ;;  %v1311_v47 = vld [vmem:[%s3335_s8 + $0x50] sm:$0xff] }
 0x18a   :  { %v2515_v49 = vpack.c.bf16 %v1312_v48, %v1311_v47 }
 0x250   :  { %v2107_v1 = vpop.f32.mrb[8].mxu0 }
 0x251   :  { %v1185_v2 = vadd.f32 %v2107_v1, %v1468_v0  ;;  %v1130_v3 = vpop.f32.mrb[9].mxu0 }
 0x252   :  { %v1184_v4 = vadd.f32 %v1468_v0, %v1130_v3 }
 0x253   :  { %v1193_v5 = vmax.f32 %v1185_v2, 0.0 }
 0x254   :  { %v1192_v6 = vmax.f32 %v1184_v4, 0.0  ;;  %v2110_v9 = vpop.f32.mrb[10].mxu0 }
 0x255   :  { %v1140_v10 = vpop.f32.mrb[11].mxu0  ;;  %v1187_v13 = vadd.f32 %v2110_v9, %v1468_v0 }
 0x256   :  { %v1200_v11 = vadd.f32 %v1193_v5, %v1192_v6  ;;  %v1186_v14 = vadd.f32 %v1468_v0, %v1140_v10 }
 0x257   :  { %v1195_v19 = vmax.f32 %v1187_v13, 0.0 }
 0x258   :  { %v1194_v15 = vmax.f32 %v1186_v14, 0.0  ;;  %v2113_v16 = vpop.f32.mrb[12].mxu0 }
 0x259   :  { %v1150_v18 = vpop.f32.mrb[13].mxu0  ;;  %v1189_v21 = vadd.f32 %v2113_v16, %v1468_v0 }
 0x25a   :  { %v1201_v20 = vadd.f32 %v1200_v11, %v1194_v15  ;;  %v1188_v24 = vadd.f32 %v1468_v0, %v1150_v18 }
 0x25b   :  { %v1197_v7 = vmax.f32 %v1189_v21, 0.0 }
 0x25c   :  { %v1196_v22 = vmax.f32 %v1188_v24, 0.0  ;;  %v1202_v25 = vadd.f32 %v1201_v20, %v1195_v19  ;;  %v2116_v27 = vpop.f32.mrb[14].mxu0 }
 0x25d   :  { %v1160_v28 = vpop.f32.mrb[15].mxu0  ;;  %v1191_v17 = vadd.f32 %v2116_v27, %v1468_v0 }
 0x25e   :  { %v1203_v12 = vadd.f32 %v1202_v25, %v1196_v22  ;;  %v1190_v23 = vadd.f32 %v1468_v0, %v1160_v28 }
 0x25f   :  { %v1199_v32 = vmax.f32 %v1191_v17, 0.0 }
 0x260   :  { %v1198_v26 = vmax.f32 %v1190_v23, 0.0  ;;  %v1204_v29 = vadd.f32 %v1203_v12, %v1197_v7 }
 0x262   :  { %v1205_v33 = vadd.f32 %v1204_v29, %v1198_v26 }
 0x264   :  { %v1206_v35 = vadd.f32 %v1205_v33, %v1199_v32 }
 0x266   :  { %2150 = vmatmul.mubr.f32.vlgmr.msra.gmra.mrb[16].mxu1 %v1206_v35 }
 0x267   :  { %2501 = vmatpush3.bf16.msra.mxu1 %v2500_v34  ;;  %2184 = vmatprep.mubr.msk.f32.mxu1 %vm2576_vm0, %v2575_v54  ;;  %v1308_v54 = vld [vmem:[%s3335_s8 + $0x38] sm:$0xff] }
 0x268   :  { %2502 = vmatprep.subr.bf16.mxu1 %v2574_v61  ;;  %v2509_v43 = vpack.c.bf16 %v1308_v54, %v1307_v42 }
 0x26b   :  { %2504 = vmatpush3.bf16.msra.mxu1 %v2503_v38 }
 0x26c   :  { %2505 = vmatprep.subr.bf16.mxu1 %v2574_v61 }
 0x26f   :  { %2507 = vmatpush3.bf16.msra.mxu1 %v2506_v41 }
 0x270   :  { %2508 = vmatprep.subr.bf16.mxu1 %v2574_v61 }
 0x273   :  { %2510 = vmatpush3.bf16.msra.mxu1 %v2509_v43 }
 0x274   :  { %2511 = vmatprep.subr.bf16.mxu1 %v2574_v61 }
 0x277   :  { %2513 = vmatpush3.bf16.msra.mxu1 %v2512_v46 }
 0x278   :  { %2514 = vmatprep.subr.bf16.mxu1 %v2574_v61 }
 0x27b   :  { %2516 = vmatpush3.bf16.msra.mxu1 %v2515_v49 }
 0x27c   :  { %2517 = vmatprep.subr.bf16.mxu1 %v2574_v61 }
 0x27f   :  { %2519 = vmatpush3.bf16.msra.mxu1 %v2518_v51 }
 0x280   :  { %2520 = vmatprep.subr.bf16.mxu1 %v2574_v61 }
 0x283   :  { %2522 = vmatpush3.bf16.msra.mxu1 %v2521_v55 }
 0x286   :  { %2185 = vmatmul.mubr.f32.vlgmr.msra.gmra.mrb[18].mxu1 %v1206_v35 }
 0x339   :  { %v1296_v57 = vpop.f32.mrb[16].mxu1 }
 0x33a   :  { %v1297_v58 = vadd.f32 %v1469_v56, %v1296_v57  ;;  %v2151_v59 = vpop.f32.mrb[17].mxu1 }
 0x33c   :  { %1300 = vst [vmem:[%s3337_s10] sm:$0xff] %v1297_v58 }
 0x359   :  { %v1390_v62 = vpop.f32.mrb[18].mxu1 }
 0x35a   :  { %v1391_v63 = vadd.f32 %v1470_v60, %v1390_v62  ;;  %v2186_v61 = vpop.f32.mrb[19].mxu1 }
 0x35c   :  { %1394 = vst [vmem:[%s3339_s11] sm:$0xff] %v1391_v63 }

</bundles_post_ra>
